<compile_context>
chip_gen: v6e
topology: v6e:2x2x1
jax: 0.10.0
libtpu: 0.0.40
codegen_flags: <defaults>
</compile_context>

<pallas_src>
import functools

import numpy as np
import jax
import jax.numpy as jnp
from jax import lax
from jax.experimental import pallas as pl
from jax.experimental.pallas import tpu as pltpu


# ----------------------------- Pallas kernel --------------------------------
def anchor_head_dense_kernel(
    x_ref,
    w1t_ref, b1_ref, w2t_ref, b2_ref,
    scale_ref, shift_ref, cos_ref,
    cls_ref, reg_ref,
    *, ncls, bbox_size,
):
    x = x_ref[0]                                    # (C, tile_v)

    # fused first conv of both branches (conv bias + BN folded into w1t / b1) + ReLU
    h = jnp.dot(w1t_ref[...], x, preferred_element_type=jnp.float32) + b1_ref[...]
    h = jnp.maximum(h, 0.0)                         # (2C, tile_v)

    # fused second conv: block-diagonal weight -> [cls | reg] in a single dot
    out = jnp.dot(w2t_ref[...], h, preferred_element_type=jnp.float32) + b2_ref[...]
    cls_ref[0] = out[:ncls]                         # (ncls, tile_v), lane-dense store

    reg = out[ncls:]                                # (n7, tile_v)

    # anchor decode, fused.  Channel index (mod bbox_size) selects the formula.
    ch = lax.broadcasted_iota(jnp.int32, reg.shape, 0) % bbox_size
    is_xyz = ch < 3
    is_size = jnp.logical_and(ch >= 3, ch < 6)
    scale = scale_ref[...]
    dec_xyz = reg * scale + shift_ref[...]                    # channels 0..2 : centers
    # exp only sees real size-channel values (others zeroed) -> no overflow risk
    dec_size = jnp.exp(jnp.where(is_size, reg, 0.0)) * scale  # channels 3..5 : sizes
    dec_dir = jax.nn.sigmoid(reg) * cos_ref[...]              # channel 6     : cos(dir)
    reg_ref[0] = jnp.where(is_xyz, dec_xyz, jnp.where(is_size, dec_size, dec_dir))


# --------------------------- parameter packing --------------------------------
def pack_params(params, anchors, bbox_size):
    """Fold conv bias + BN into the weights, fuse the two branches, and build
    per-voxel anchor-decode tables in (channel, voxel) layout."""
    C = params["w1c"].shape[0]
    ncls = params["w2c"].shape[1]
    n7 = params["w2r"].shape[1]

    # fold:  sc*(W1 x + b1) + sh  ==  (W1*sc) x + (b1*sc + sh)
    w1c = params["w1c"] * params["sc_c"]                       # (C, C)
    b1c = params["b1c"] * params["sc_c"] + params["sh_c"]      # (1, C)
    w1r = params["w1r"] * params["sc_r"]
    b1r = params["b1r"] * params["sc_r"] + params["sh_r"]

    # transposed + stacked first layer: one (2C, C) weight, (2C, 1) bias
    w1t = jnp.concatenate([w1c.T, w1r.T], axis=0)
    b1 = jnp.concatenate([b1c, b1r], axis=1).T                 # (2C, 1)

    # transposed block-diagonal second layer: (ncls+n7, 2C)
    zc = jnp.zeros((ncls, C), jnp.float32)
    zr = jnp.zeros((n7, C), jnp.float32)
    w2t = jnp.concatenate(
        [jnp.concatenate([params["w2c"].T, zc], axis=1),
         jnp.concatenate([zr, params["w2r"].T], axis=1)],
        axis=0,
    )
    b2 = jnp.concatenate([params["b2c"], params["b2r"]], axis=1).T   # (ncls+n7, 1)

    # anchor decode tables, (n7, V) layout matching the reg output rows
    X, Y, Z, A, _ = anchors.shape
    V = X * Y * Z
    anc = anchors.reshape(V, A, bbox_size)
    scale = jnp.concatenate(
        [anc[..., 3:6], anc[..., 3:6], jnp.ones_like(anc[..., :1])], axis=-1
    ).reshape(V, n7).T
    shift = jnp.concatenate(
        [anc[..., 0:3], jnp.zeros_like(anc[..., 3:6]), jnp.zeros_like(anc[..., :1])],
        axis=-1,
    ).reshape(V, n7).T
    cosd = jnp.concatenate(
        [jnp.zeros_like(anc[..., 0:6]), jnp.cos(anc[..., 6:7])], axis=-1
    ).reshape(V, n7).T

    return {
        "w1t": w1t, "b1": b1, "w2t": w2t, "b2": b2,
        "scale": scale, "shift": shift, "cos": cosd,
        "C": C, "ncls": ncls, "n7": n7, "bbox_size": bbox_size,
    }


# ------------------------------ JAX wrapper ----------------------------------
def anchor_head_dense_forward(x_ncdhw, packed, *, tile_v_cap=2048):
    B, C, X, Y, Z = x_ncdhw.shape
    V = X * Y * Z
    ncls, n7, bbox_size = packed["ncls"], packed["n7"], packed["bbox_size"]
    A = n7 // bbox_size
    assert C == packed["C"]
    assert V % 128 == 0, "X*Y*Z must be a multiple of 128 for lane-dense tiles"

    # channels-first is already the PyTorch layout -> pure reshape, no transpose
    xf = x_ncdhw.reshape(B, C, V)

    # largest lane-dense tile that divides V (keeps grid steps minimal)
    tile_v = min(V, tile_v_cap)
    while V % tile_v:
        tile_v -= 128
    grid = (B, V // tile_v)

    kernel = functools.partial(
        anchor_head_dense_kernel, ncls=ncls, bbox_size=bbox_size
    )

    def full_spec(r, c):
        return pl.BlockSpec((r, c), lambda b, v: (0, 0))

    def vox_spec(r):                     # anchor tables: no batch tiling
        return pl.BlockSpec((r, tile_v), lambda b, v: (0, v))

    cls_out, reg_out = pl.pallas_call(
        kernel,
        out_shape=(
            jax.ShapeDtypeStruct((B, ncls, V), jnp.float32),
            jax.ShapeDtypeStruct((B, n7, V), jnp.float32),
        ),
        grid_spec=pltpu.PrefetchScalarGridSpec(
            num_scalar_prefetch=0,
            grid=grid,
            in_specs=[
                pl.BlockSpec((1, C, tile_v), lambda b, v: (b, 0, v)),
                full_spec(2 * C, C),          # w1t
                full_spec(2 * C, 1),          # b1
                full_spec(ncls + n7, 2 * C),  # w2t (block-diagonal)
                full_spec(ncls + n7, 1),      # b2
                vox_spec(n7),                 # scale
                vox_spec(n7),                 # shift
                vox_spec(n7),                 # cos
            ],
            out_specs=[
                pl.BlockSpec((1, ncls, tile_v), lambda b, v: (b, 0, v)),
                pl.BlockSpec((1, n7, tile_v), lambda b, v: (b, 0, v)),
            ],
        ),
        compiler_params=pltpu.CompilerParams(
            dimension_semantics=("parallel", "parallel"),
        ),
    )(
        xf,
        packed["w1t"], packed["b1"], packed["w2t"], packed["b2"],
        packed["scale"], packed["shift"], packed["cos"],
    )

    # back to (B, X, Y, Z, channels) like the PyTorch permute(0,2,3,4,1)
    cls_pred = jnp.transpose(cls_out, (0, 2, 1)).reshape(B, X, Y, Z, ncls)

    reg_bv = jnp.transpose(reg_out, (0, 2, 1)).reshape(B, V, A, bbox_size)
    # TODO(synk): atan2 has no verified Pallas/Mosaic TPU lowering; final direction
    # decode (atan2(c, sqrt(1-c^2)) == arcsin(c) for |c|<=1) applied in glue on a
    # 1/bbox_size slice only (no full-tensor .at[].set round trip).
    dirv = jnp.arcsin(reg_bv[..., bbox_size - 1:bbox_size])
    box_reg = jnp.concatenate([reg_bv[..., : bbox_size - 1], dirv], axis=-1)
    box_reg = box_reg.reshape(B, X, Y, Z, n7)
    return cls_pred, box_reg


# ------------------------ anchor generation (glue) ----------------------------
def generate_anchors(anchor_sizes, pc_range, grid_size):
    """Mirrors AnchorHeadDense.generate_anchors (ij meshgrid, +stride/2 offset)."""
    pc_range = np.asarray(pc_range, dtype=np.float32)
    grid_size = np.asarray(grid_size)
    A = anchor_sizes.shape[0]
    stride = (pc_range[3:] - pc_range[:3]) / grid_size
    xs = np.arange(pc_range[0], pc_range[3], stride[0], dtype=np.float32)
    ys = np.arange(pc_range[1], pc_range[4], stride[1], dtype=np.float32)
    zs = np.arange(pc_range[2], pc_range[5], stride[2], dtype=np.float32)
    xc, yc, zc = np.meshgrid(xs, ys, zs, indexing="ij")
    centers = np.stack([xc, yc, zc], axis=-1)                    # (X, Y, Z, 3)
    centers = np.repeat(centers[:, :, :, None, :], A, axis=3)    # (X, Y, Z, A, 3)
    sizes = np.broadcast_to(
        anchor_sizes.astype(np.float32), (*centers.shape[:3], A, anchor_sizes.shape[1])
    ).copy()
    anchors = np.concatenate([centers, sizes], axis=-1)          # (X, Y, Z, A, 7)
    anchors[..., :3] += (stride / 2)[None, :]
    return jnp.asarray(anchors, dtype=jnp.float32), A


# ----------------------- deterministic parameter init -------------------------
def init_params(key, in_feat, ncls_out, nreg_out, eps=1e-5):
    ks = jax.random.split(key, 20)

    def lin(k, cin, cout, scale=0.06):
        return scale * jax.random.normal(k, (cin, cout), jnp.float32)

    def bias(k, c, scale=0.02):
        return scale * jax.random.normal(k, (1, c), jnp.float32)

    def folded_bn(k1, k2, k3, k4, c):
        gamma = 1.0 + 0.1 * jax.random.normal(k1, (c,), jnp.float32)
        beta = 0.05 * jax.random.normal(k2, (c,), jnp.float32)
        mean = 0.1 * jax.random.normal(k3, (c,), jnp.float32)
        var = 1.0 + 0.2 * jax.random.uniform(k4, (c,), jnp.float32)
        sc = gamma / jnp.sqrt(var + eps)
        sh = beta - mean * sc
        return sc.reshape(1, c), sh.reshape(1, c)

    sc_c, sh_c = folded_bn(ks[4], ks[5], ks[6], ks[7], in_feat)
    sc_r, sh_r = folded_bn(ks[12], ks[13], ks[14], ks[15], in_feat)
    return {
        # classification branch
        "w1c": lin(ks[0], in_feat, in_feat), "b1c": bias(ks[1], in_feat),
        "sc_c": sc_c, "sh_c": sh_c,
        "w2c": lin(ks[2], in_feat, ncls_out), "b2c": bias(ks[3], ncls_out),
        # regression branch
        "w1r": lin(ks[8], in_feat, in_feat), "b1r": bias(ks[9], in_feat),
        "sc_r": sc_r, "sh_r": sh_r,
        "w2r": lin(ks[10], in_feat, nreg_out), "b2r": bias(ks[11], nreg_out),
    }


# ------------------------- pure-JAX reference ---------------------------------
def reference_forward(x_ncdhw, params, anchors, bbox_size):
    B, C, X, Y, Z = x_ncdhw.shape
    V = X * Y * Z
    A = anchors.shape[3]
    xf = jnp.transpose(x_ncdhw, (0, 2, 3, 4, 1)).reshape(B * V, C)

    h = jnp.maximum((xf @ params["w1c"] + params["b1c"]) * params["sc_c"] + params["sh_c"], 0.0)
    cls = h @ params["w2c"] + params["b2c"]
    g = jnp.maximum((xf @ params["w1r"] + params["b1r"]) * params["sc_r"] + params["sh_r"], 0.0)
    reg = (g @ params["w2r"] + params["b2r"]).reshape(B * V, A, bbox_size)

    anc = jnp.tile(anchors.reshape(V, A, bbox_size), (B, 1, 1))
    xyz = reg[..., :3] * anc[..., 3:6] + anc[..., :3]
    sz = jnp.exp(reg[..., 3:6]) * anc[..., 3:6]
    cosv = jax.nn.sigmoid(reg[..., 6]) * jnp.cos(anc[..., 6])
    dirv = jnp.arctan2(cosv, jnp.sqrt(1.0 - cosv * cosv))
    dec = jnp.concatenate([xyz, sz, dirv[..., None]], axis=-1)
    ncls = params["w2c"].shape[1]
    return cls.reshape(B, X, Y, Z, ncls), dec.reshape(B, X, Y, Z, A * bbox_size)


# ----------------------------------- main --------------------------------------
if __name__ == "__main__":
    key = jax.random.PRNGKey(0)
    B, C = 2, 32                       # batch, in_feat
    grid_size = (8, 8, 4)              # feature-map spatial shape (X, Y, Z)
    pc_range = [0.0, 0.0, -2.0, 8.0, 8.0, 2.0]
    class_names = ["car", "pedestrian", "cyclist"]
    num_class = len(class_names) + 1
    bbox_size = 7

    # TODO(synk): gen_anchor_sizes(anchor_config) is an external helper not provided;
    # synthesize its (A, 4) output [size_x, size_y, size_z, dir] directly.
    anchor_sizes = np.array(
        [[3.9, 1.6, 1.56, 0.0],
         [3.9, 1.6, 1.56, np.pi / 2]], dtype=np.float32
    )
    anchors, num_anchors_per_vox = generate_anchors(anchor_sizes, pc_range, grid_size)
    ncls_out = num_anchors_per_vox * num_class
    nreg_out = num_anchors_per_vox * bbox_size

    kx, kp = jax.random.split(key)
    x = 0.5 * jax.random.normal(kx, (B, C, *grid_size), jnp.float32)  # NCDHW, like PyTorch
    params = init_params(kp, C, ncls_out, nreg_out)
    packed = pack_params(params, anchors, bbox_size)

    cls_pred, box_reg = anchor_head_dense_forward(x, packed)
    (cls_pred, box_reg) = jax.block_until_ready((cls_pred, box_reg))

    # correctness check vs pure-JAX reference (unfolded, unfused path)
    cls_ref, reg_ref = reference_forward(x, params, anchors, bbox_size)
    assert cls_pred.shape == (B, *grid_size, ncls_out)
    assert box_reg.shape == (B, *grid_size, nreg_out)
    np.testing.assert_allclose(np.asarray(cls_pred), np.asarray(cls_ref), rtol=2e-3, atol=2e-3)
    np.testing.assert_allclose(np.asarray(box_reg), np.asarray(reg_ref), rtol=2e-3, atol=2e-3)

    print("KERNEL_OK")
</pallas_src>

<mosaic_0001>
module attributes {stable_mosaic.version = 11 : i64} {
  func.func @anchor_head_dense_kernel(%arg0: i32, %arg1: i32, %arg2: memref<1x32x256xf32, #tpu.memory_space<vmem>>, %arg3: memref<64x32xf32, #tpu.memory_space<vmem>>, %arg4: memref<64x1xf32, #tpu.memory_space<vmem>>, %arg5: memref<22x64xf32, #tpu.memory_space<vmem>>, %arg6: memref<22x1xf32, #tpu.memory_space<vmem>>, %arg7: memref<14x256xf32, #tpu.memory_space<vmem>>, %arg8: memref<14x256xf32, #tpu.memory_space<vmem>>, %arg9: memref<14x256xf32, #tpu.memory_space<vmem>>, %arg10: memref<1x8x256xf32, #tpu.memory_space<vmem>>, %arg11: memref<1x14x256xf32, #tpu.memory_space<vmem>>) attributes {dimension_semantics = [#tpu.dimension_semantics<parallel>, #tpu.dimension_semantics<parallel>], iteration_bounds = array<i64: 2, 1>, scalar_prefetch = 0 : i64, scratch_operands = 0 : i64, tpu.core_type = #tpu.core_type<tc>, window_params = [{transform_indices = @transform_0, window_bounds = array<i64: 1, 32, 256>}, {pipeline_mode = #tpu.pipeline_mode<synchronous>, transform_indices = @transform_1, window_bounds = array<i64: 64, 32>}, {pipeline_mode = #tpu.pipeline_mode<synchronous>, transform_indices = @transform_2, window_bounds = array<i64: 64, 1>}, {pipeline_mode = #tpu.pipeline_mode<synchronous>, transform_indices = @transform_3, window_bounds = array<i64: 22, 64>}, {pipeline_mode = #tpu.pipeline_mode<synchronous>, transform_indices = @transform_4, window_bounds = array<i64: 22, 1>}, {transform_indices = @transform_5, window_bounds = array<i64: 14, 256>}, {transform_indices = @transform_6, window_bounds = array<i64: 14, 256>}, {transform_indices = @transform_7, window_bounds = array<i64: 14, 256>}, {transform_indices = @transform_8, window_bounds = array<i64: 1, 8, 256>}, {transform_indices = @transform_9, window_bounds = array<i64: 1, 14, 256>}]} {
    %c0 = arith.constant 0 : index
    %c0_0 = arith.constant 0 : index
    %c0_1 = arith.constant 0 : index
    %0 = vector.load %arg2[%c0, %c0_0, %c0_1] : memref<1x32x256xf32, #tpu.memory_space<vmem>>, vector<1x32x256xf32>
    %1 = vector.shape_cast %0 : vector<1x32x256xf32> to vector<32x256xf32>
    %c0_2 = arith.constant 0 : index
    %c0_3 = arith.constant 0 : index
    %2 = vector.load %arg3[%c0_2, %c0_3] : memref<64x32xf32, #tpu.memory_space<vmem>>, vector<64x32xf32>
    %cst = arith.constant dense<0.000000e+00> : vector<64x256xf32>
    %3 = tpu.matmul %2, %1, %cst {dimension_numbers = #tpu.dot_dimension_numbers<[1], [0], [0], [1], [0, 0, 1, 1], [], []>} : vector<64x32xf32>, vector<32x256xf32>, vector<64x256xf32> -> vector<64x256xf32>
    %c0_4 = arith.constant 0 : index
    %c0_5 = arith.constant 0 : index
    %4 = vector.load %arg4[%c0_4, %c0_5] : memref<64x1xf32, #tpu.memory_space<vmem>>, vector<64x1xf32>
    %5 = vector.broadcast %4 : vector<64x1xf32> to vector<64x256xf32>
    %6 = arith.addf %3, %5 : vector<64x256xf32>
    %cst_6 = arith.constant 0.000000e+00 : f32
    %7 = vector.broadcast %cst_6 : f32 to vector<64x256xf32>
    %8 = arith.maximumf %6, %7 : vector<64x256xf32>
    %c0_7 = arith.constant 0 : index
    %c0_8 = arith.constant 0 : index
    %9 = vector.load %arg5[%c0_7, %c0_8] : memref<22x64xf32, #tpu.memory_space<vmem>>, vector<22x64xf32>
    %cst_9 = arith.constant dense<0.000000e+00> : vector<22x256xf32>
    %10 = tpu.matmul %9, %8, %cst_9 {dimension_numbers = #tpu.dot_dimension_numbers<[1], [0], [0], [1], [0, 0, 1, 1], [], []>} : vector<22x64xf32>, vector<64x256xf32>, vector<22x256xf32> -> vector<22x256xf32>
    %c0_10 = arith.constant 0 : index
    %c0_11 = arith.constant 0 : index
    %11 = vector.load %arg6[%c0_10, %c0_11] : memref<22x1xf32, #tpu.memory_space<vmem>>, vector<22x1xf32>
    %12 = vector.broadcast %11 : vector<22x1xf32> to vector<22x256xf32>
    %13 = arith.addf %10, %12 : vector<22x256xf32>
    %14 = vector.extract_strided_slice %13 {offsets = [0, 0], sizes = [8, 256], strides = [1, 1]} : vector<22x256xf32> to vector<8x256xf32>
    %c0_12 = arith.constant 0 : index
    %c0_13 = arith.constant 0 : index
    %c0_14 = arith.constant 0 : index
    %15 = vector.load %arg10[%c0_12, %c0_13, %c0_14] : memref<1x8x256xf32, #tpu.memory_space<vmem>>, vector<1x8x256xf32>
    %16 = vector.shape_cast %15 : vector<1x8x256xf32> to vector<8x256xf32>
    %17 = vector.shape_cast %14 : vector<8x256xf32> to vector<1x8x256xf32>
    tpu.vector_store %arg10[%c0_12, %c0_13, %c0_14], %17 {strides = array<i32>} : memref<1x8x256xf32, #tpu.memory_space<vmem>>, vector<1x8x256xf32>,
    %18 = vector.extract_strided_slice %13 {offsets = [8, 0], sizes = [14, 256], strides = [1, 1]} : vector<22x256xf32> to vector<14x256xf32>
    %19 = tpu.iota {dimensions = array<i32: 0>} : vector<14x256xi32>
    %c7_i32 = arith.constant 7 : i32
    %c0_i32 = arith.constant 0 : i32
    %20 = arith.cmpi eq, %c7_i32, %c0_i32 : i32
    %c1_i32 = arith.constant 1 : i32
    %21 = arith.select %20, %c1_i32, %c7_i32 : i32
    %22 = vector.broadcast %21 : i32 to vector<14x256xi32>
    %23 = arith.remsi %19, %22 : vector<14x256xi32>
    %c0_i32_15 = arith.constant 0 : i32
    %24 = vector.broadcast %c0_i32_15 : i32 to vector<14x256xi32>
    %25 = arith.cmpi ne, %23, %24 : vector<14x256xi32>
    %c0_i32_16 = arith.constant 0 : i32
    %26 = vector.broadcast %c0_i32_16 : i32 to vector<14x256xi32>
    %27 = arith.cmpi slt, %23, %26 : vector<14x256xi32>
    %c0_i32_17 = arith.constant 0 : i32
    %28 = arith.cmpi slt, %21, %c0_i32_17 : i32
    %29 = vector.broadcast %28 : i1 to vector<14x256xi1>
    %30 = vector.broadcast %29 : vector<14x256xi1> to vector<14x256xi1>
    %31 = arith.xori %27, %30 : vector<14x256xi1>
    %32 = arith.andi %31, %25 : vector<14x256xi1>
    %33 = vector.broadcast %21 : i32 to vector<14x256xi32>
    %34 = arith.addi %23, %33 : vector<14x256xi32>
    %35 = arith.select %32, %34, %23 : vector<14x256xi1>, vector<14x256xi32>
    %c3_i32 = arith.constant 3 : i32
    %36 = vector.broadcast %c3_i32 : i32 to vector<14x256xi32>
    %37 = arith.cmpi slt, %35, %36 : vector<14x256xi32>
    %c3_i32_18 = arith.constant 3 : i32
    %38 = vector.broadcast %c3_i32_18 : i32 to vector<14x256xi32>
    %39 = arith.cmpi sge, %35, %38 : vector<14x256xi32>
    %c6_i32 = arith.constant 6 : i32
    %40 = vector.broadcast %c6_i32 : i32 to vector<14x256xi32>
    %41 = arith.cmpi slt, %35, %40 : vector<14x256xi32>
    %42 = arith.andi %39, %41 : vector<14x256xi1>
    %c0_19 = arith.constant 0 : index
    %c0_20 = arith.constant 0 : index
    %43 = vector.load %arg7[%c0_19, %c0_20] : memref<14x256xf32, #tpu.memory_space<vmem>>, vector<14x256xf32>
    %44 = arith.mulf %18, %43 : vector<14x256xf32>
    %c0_21 = arith.constant 0 : index
    %c0_22 = arith.constant 0 : index
    %45 = vector.load %arg8[%c0_21, %c0_22] : memref<14x256xf32, #tpu.memory_space<vmem>>, vector<14x256xf32>
    %46 = arith.addf %44, %45 : vector<14x256xf32>
    %cst_23 = arith.constant 0.000000e+00 : f32
    %47 = vector.broadcast %cst_23 : f32 to vector<14x256xf32>
    %48 = arith.select %42, %18, %47 : vector<14x256xi1>, vector<14x256xf32>
    %49 = math.exp %48 : vector<14x256xf32>
    %50 = arith.mulf %49, %43 : vector<14x256xf32>
    %51 = arith.negf %18 : vector<14x256xf32>
    %52 = math.exp %51 : vector<14x256xf32>
    %cst_24 = arith.constant 1.000000e+00 : f32
    %53 = vector.broadcast %cst_24 : f32 to vector<14x256xf32>
    %54 = arith.addf %53, %52 : vector<14x256xf32>
    %55 = arith.divf %53, %54 : vector<14x256xf32>
    %c0_25 = arith.constant 0 : index
    %c0_26 = arith.constant 0 : index
    %56 = vector.load %arg9[%c0_25, %c0_26] : memref<14x256xf32, #tpu.memory_space<vmem>>, vector<14x256xf32>
    %57 = arith.mulf %55, %56 : vector<14x256xf32>
    %58 = arith.select %42, %50, %57 : vector<14x256xi1>, vector<14x256xf32>
    %59 = arith.select %37, %46, %58 : vector<14x256xi1>, vector<14x256xf32>
    %c0_27 = arith.constant 0 : index
    %c0_28 = arith.constant 0 : index
    %c0_29 = arith.constant 0 : index
    %60 = vector.load %arg11[%c0_27, %c0_28, %c0_29] : memref<1x14x256xf32, #tpu.memory_space<vmem>>, vector<1x14x256xf32>
    %61 = vector.shape_cast %60 : vector<1x14x256xf32> to vector<14x256xf32>
    %62 = vector.shape_cast %59 : vector<14x256xf32> to vector<1x14x256xf32>
    tpu.vector_store %arg11[%c0_27, %c0_28, %c0_29], %62 {strides = array<i32>} : memref<1x14x256xf32, #tpu.memory_space<vmem>>, vector<1x14x256xf32>,
    return
  }
  func.func @transform_0(%arg0: i32, %arg1: i32) -> (i32, i32, i32) {
    %c0_i32 = arith.constant 0 : i32
    %c0_i32_0 = arith.constant 0 : i32
    return %arg0, %c0_i32, %arg1 : i32, i32, i32
  }
  func.func @transform_1(%arg0: i32, %arg1: i32) -> (i32, i32) {
    %c0_i32 = arith.constant 0 : i32
    %c0_i32_0 = arith.constant 0 : i32
    %c0_i32_1 = arith.constant 0 : i32
    return %c0_i32, %c0_i32_0 : i32, i32
  }
  func.func @transform_2(%arg0: i32, %arg1: i32) -> (i32, i32) {
    %c0_i32 = arith.constant 0 : i32
    %c0_i32_0 = arith.constant 0 : i32
    %c0_i32_1 = arith.constant 0 : i32
    return %c0_i32, %c0_i32_0 : i32, i32
  }
  func.func @transform_3(%arg0: i32, %arg1: i32) -> (i32, i32) {
    %c0_i32 = arith.constant 0 : i32
    %c0_i32_0 = arith.constant 0 : i32
    %c0_i32_1 = arith.constant 0 : i32
    return %c0_i32, %c0_i32_0 : i32, i32
  }
  func.func @transform_4(%arg0: i32, %arg1: i32) -> (i32, i32) {
    %c0_i32 = arith.constant 0 : i32
    %c0_i32_0 = arith.constant 0 : i32
    %c0_i32_1 = arith.constant 0 : i32
    return %c0_i32, %c0_i32_0 : i32, i32
  }
  func.func @transform_5(%arg0: i32, %arg1: i32) -> (i32, i32) {
    %c0_i32 = arith.constant 0 : i32
    %c0_i32_0 = arith.constant 0 : i32
    return %c0_i32, %arg1 : i32, i32
  }
  func.func @transform_6(%arg0: i32, %arg1: i32) -> (i32, i32) {
    %c0_i32 = arith.constant 0 : i32
    %c0_i32_0 = arith.constant 0 : i32
    return %c0_i32, %arg1 : i32, i32
  }
  func.func @transform_7(%arg0: i32, %arg1: i32) -> (i32, i32) {
    %c0_i32 = arith.constant 0 : i32
    %c0_i32_0 = arith.constant 0 : i32
    return %c0_i32, %arg1 : i32, i32
  }
  func.func @transform_8(%arg0: i32, %arg1: i32) -> (i32, i32, i32) {
    %c0_i32 = arith.constant 0 : i32
    %c0_i32_0 = arith.constant 0 : i32
    return %arg0, %c0_i32, %arg1 : i32, i32, i32
  }
  func.func @transform_9(%arg0: i32, %arg1: i32) -> (i32, i32, i32) {
    %c0_i32 = arith.constant 0 : i32
    %c0_i32_0 = arith.constant 0 : i32
    return %arg0, %c0_i32, %arg1 : i32, i32, i32
  }
}

</mosaic_0001>

<bundles_post_ra>
// kernel: tpu_custom_call.1
= control target key start
LH: loop header
LB: loop body
LE: loop exit
PB: predicated region body
PF: predicated region fallthrough
CT: control target
= control target key end

     0   :  { %15 = vsyncpa [#allocation3], 0  ;;  %s1813_s0 = inlined_call_operand.vmem [shape: f32[2,32,256], index: 0, kind: input, shape index: {}]   ;;  %s1814_s1 = inlined_call_operand.vmem [shape: f32[64,32], index: 1, kind: input, shape index: {}]   ;;  %s1815_s2 = inlined_call_operand.vmem [shape: f32[64,1], index: 2, kind: input, shape index: {}]   ;;  %s1816_s3 = inlined_call_operand.hbm [shape: f32[22,64], index: 3, kind: input, shape index: {}]   ;;  %s1817_s4 = inlined_call_operand.vmem [shape: f32[22,1], index: 4, kind: input, shape index: {}]   ;;  %s1818_s5 = inlined_call_operand.vmem [shape: f32[14,256], index: 5, kind: input, shape index: {}]   ;;  %s1819_s6 = inlined_call_operand.vmem [shape: f32[14,256], index: 6, kind: input, shape index: {}]   ;;  %s1820_s7 = inlined_call_operand.hbm [shape: f32[14,256], index: 7, kind: input, shape index: {}]   ;;  %s1821_s8 = inlined_call_operand.hbm [shape: f32[2,8,256], index: 8, kind: output, shape index: {0}]   ;;  %s1822_s9 = inlined_call_operand.vmem [shape: f32[2,14,256], index: 9, kind: output, shape index: {1}]  }
   0x1   :  { %16 = vsyncpa [#allocation6], 0 }
   0x2   :  { %17 = vsyncpa [#allocation4], 0 }
   0x3   :  { %19 = vsyncpa [#allocation4 + $0x1], 0  ;;  %s1473_s30 = smov 0   ;;  %s1475_s10 = smov 0  }
   0x4   :  { %s1477_s11 = smov 0   ;;  %s1479_s12 = smov 0  }
   0x5   :  { %s1481_s13 = smov 0   ;;  %s1483_s14 = smov 0  }
   0x6 LB: > { %1826 = sst [smem:[#allocation11_spill]] %s1408_s13  ;;  %s1125_s15 = sadd.s32 4294967295, %s1412_s14   ;;  %s1412_s14 = sphi %s1483_s14, %s25_s14   ;;  %s1408_s13 = sphi %s1481_s13, %s1844_s13   ;;  %s1404_s12 = sphi %s1479_s12, %s1843_s12   ;;  %s1400_s11 = sphi %s1477_s11, %s1847_s11   ;;  %s1396_s10 = sphi %s1475_s10, %s1846_s10   ;;  %s1392_s30 = sphi %s1473_s30, %s1845_s30  }
   0x7   : > { %s1126_s16 = sadd.s32 4294967294, %s1412_s14   ;;  %s37_s17 = sadd.s32 1, %s1408_s13 }
   0x8   : > { %s236_s18 = sadd.s32 1, %s1400_s11  ;;  %p39_p0 = scmp.ge.s32.totalorder %s37_s17, 2 }
   0x9   : > { %p246_p1 = scmp.ne.s32.totalorder %s1400_s11, %s1396_s10  ;;  %p247_p2 = scmp.eq.s32.totalorder %s1125_s15, 1 }
   0xa   : > { %p252_p3 = scmp.ne.s32.totalorder %s1396_s10, %s1392_s30  ;;  %s1849_s17 = smov (%p39_p0, %s37_s17), 0 }
   0xb   : > { %1827 = sst [smem:[#allocation12_spill]] %s1849_s17  ;;  %p1513_p4 = por %p247_p2, %p246_p1 }
   0xc   : > { %p253_p5 = scmp.eq.s32.totalorder %s1126_s16, 1  ;;  %s231_s20 = ssub.s32 %s1408_s13, %s1849_s17 }
   0xd   : > { %s1828_s19 = scalar_select %p1513_p4, 1, 0 }
   0xe   : > { %p1127_p6 = scmp.ge.s32.totalorder %s1412_s14, 1  ;;  %p234_p7 = scmp.eq.s32.totalorder %s231_s20, 0 }
   0xf   : > { %p1520_p8 = por %p253_p5, %p252_p3  ;;  %p288_p9 = scmp.lt.s32.totalorder %s1412_s14, 3 }
  0x10   : > { %s1526_s22 = scalar_select %p234_p7, %s1400_s11, %s236_s18  }
  0x11   : > { %s1829_s21 = scalar_select %p1520_p8, 1, 0 }
  0x12   : > { %1830 = sst [smem:[#allocation13_spill]] %s1526_s22  ;;  %p1528_p10 = pnand %p1127_p6, %p288_p9 }
  0x13   : > { %p1532_p11 = scmp.eq.s32.totalorder %s1125_s15, 0  ;;  %s1414_s25 = smov [#allocation2]  }
  0x14   : > { %p1178_p12 = pneg %p1528_p10  ;;  %s306_s26 = sshll.u32 %s1414_s25, 4  ;;  %s307_s26 = int_to_ptr.vmem [resolvable:$true] %s306_s26 }
  0x15   : > { %s1415_s28 = smov [#allocation5]   ;;  %s1287_s15 = scalar_lea.vmem %s307_s26, 384 }
  0x16   : > { %p1540_p13 = pnand %p1532_p11, %p1178_p12  ;;  %s343_s29 = sshll.u32 %s1415_s28, 4  ;;  %s344_s29 = int_to_ptr.vmem [resolvable:$true] %s343_s29 }
  0x17   : > { %p1288_p1 = scmp.ne.s32.totalorder %s307_s26, %s1287_s15  ;;  %p1295_p5 = scmp.lt.s32.totalorder %s307_s26, %s307_s26 }
  0x18   : > { %p1278_p0 = pneg %p1540_p13  ;;  %p1296_p6 = scmp.lt.s32.totalorder %s1287_s15, %s1287_s15 }
  0x1a   : > { %p1290_p2 = pnand %p1288_p1, %p1278_p0  ;;  %p1297_p7 = por %p1296_p6, %p1295_p5 }
  0x1c   : > { %p1291_p3 = pneg %p1290_p2 }
  0x1e   : > { %p1298_p9 = pnand %p1297_p7, %p1291_p3 }
  0x20   : > { %1301 = shalt.err (!%p1298_p9)
}
  0x21   : > { %s1416_s16 = smov 128   ;;  %s1417_s18 = smov 8  }
  0x22   : > { %1181 = dma.hbm_to_vmem [thread:$0]  (!%p1540_p13), %s1816_s3, 384, %s307_s26, [#allocation3], %s1416_s16, %s1416_s16, %s1417_s18  }
  0x23   : > { %s1313_s28 = scalar_lea.vmem %s344_s29, 512  ;;  %p1321_p8 = scmp.lt.s32.totalorder %s344_s29, %s344_s29 }
  0x24   : > { %p1314_p12 = scmp.ne.s32.totalorder %s344_s29, %s1313_s28  ;;  %p1322_p4 = scmp.lt.s32.totalorder %s1313_s28, %s1313_s28 }
  0x26   : > { %p1316_p1 = pnand %p1314_p12, %p1278_p0  ;;  %p1323_p5 = por %p1322_p4, %p1321_p8 }
  0x28   : > { %p1317_p2 = pneg %p1316_p1 }
  0x2a   : > { %p1324_p3 = pnand %p1323_p5, %p1317_p2 }
  0x2c   : > { %1327 = shalt.err (!%p1324_p3)
}
  0x2d   : > { %s1418_s15 = smov 256   ;;  %s1419_s17 = smov 16  }
  0x2e   : > { %1184 = dma.hbm_to_vmem [thread:$0]  (!%p1540_p13), %s1820_s7, 512, %s344_s29, [#allocation6], %s1418_s15, %s1418_s15, %s1419_s17  }
  0x2f   : > { %372 = sbr.rel (%p1528_p10) target bundleno = 566 (0x236), region = 52 }
  0x34   : > { %1379 = dma.done.wait (%p1532_p11), [#allocation3], 384  }
  0x35   : > { %1381 = vsyncadd (%p1532_p11), [#allocation3], 4294966912 }
  0x36   : > { %1383 = dma.done.wait (%p1532_p11), [#allocation6], 512  }
  0x37   : > { %1385 = vsyncadd (%p1532_p11), [#allocation6], 4294966784  ;;  %p436_p4 = scmp.lt.s32.totalorder %s1404_s12, 1  ;;  %v1420_v0 = vmov 0.0   ;;  %v1421_v1 = vmov 0   ;;  %v490_v10 = vld [vmem:[%s1815_s2 + $0x28] sm:$0xff] }
  0x38   : > { %622 = vmatprep.mubr.f32.mxu0 %v1420_v0  ;;  %1251 = vset.pattern.permute.xlu1 %v1421_v1  ;;  %v492_v11 = vld [vmem:[%s1815_s2 + $0x38] sm:$0xff]  ;;  %v477_v12 = vld [vmem:[%s1814_s1] sm:$0xff]  ;;  %vm533_vm0 = vcmask 261120   ;;  %v491_v14 = vld [vmem:[%s1815_s2 + $0x30] sm:$0xff]  ;;  %vm708_vm1 = vcmask 523264   ;;  %s1163_s27 = sshll.u32 %s1404_s12, 8 }
  0x39   : > { %s1576_s13 = scalar_select %p436_p4, %s1404_s12, 1  ;;  %1250 = vset.pattern.permute.xlu0 %v1421_v1  ;;  %782 = vmatprep.mubr.f32.mxu1 %v1420_v0  ;;  %v489_v13 = vld [vmem:[%s1815_s2 + $0x20] sm:$0xff]  ;;  %v478_v15 = vld [vmem:[%s1814_s1 + $0x8] sm:$0xff]  ;;  %v487_v16 = vld [vmem:[%s1815_s2 + $0x10] sm:$0xff] }
  0x3a   : > { %520 = vperm.xlu1 %1251, %v490_v10   ;;  %530 = vperm.xlu0 %1250, %v492_v11   ;;  %v488_v17 = vld [vmem:[%s1815_s2 + $0x18] sm:$0xff]  ;;  %v479_v18 = vld [vmem:[%s1814_s1 + $0x10] sm:$0xff]  ;;  %v485_v19 = vld [vmem:[%s1815_s2] sm:$0xff]  ;;  %s1673_s25 = scalar_lea.hbm %s1821_s8, %s1163_s27  ;;  %p1836_p10 = scmp.ne.s32.totalorder %s1828_s19, 0 }
  0x3b   : > { %s1161_s17 = sshll.u32 %s1576_s13, 6  ;;  %v486_v20 = vld [vmem:[%s1815_s2 + $0x8] sm:$0xff]  ;;  %v480_v21 = vld [vmem:[%s1814_s1 + $0x18] sm:$0xff]  ;;  %v692_v22 = vld [vmem:[%s1817_s4 + $0x10] sm:$0x3f]  ;;  %s1422_s15 = smov [#allocation7]  }
  0x3c   : > { %s443_s24 = scalar_lea.vmem %s1813_s0, %s1161_s17  ;;  %v691_v23 = vld [vmem:[%s1817_s4 + $0x8] sm:$0xff]  ;;  %v481_v24 = vld [vmem:[%s1814_s1 + $0x20] sm:$0xff]  ;;  %v483_v27 = vld [vmem:[%s1814_s1 + $0x30] sm:$0xff]  ;;  %s1332_s17 = sshll.u32 %s1422_s15, 4  ;;  %s1333_s17 = int_to_ptr.vmem [resolvable:$false] %s1332_s17 }
  0x3d   : > { %v476_v2 = vld [vmem:[%s443_s24 + $0x38] sm:$0xff]  ;;  %v475_v3 = vld [vmem:[%s443_s24 + $0x30] sm:$0xff]  ;;  %v474_v4 = vld [vmem:[%s443_s24 + $0x28] sm:$0xff]  ;;  %s1334_s22 = scalar_lea.vmem %s1333_s17, 512 }
  0x3e   : > { %582 = vmatprep.subr.mxu0 %v476_v2  ;;  %v473_v5 = vld [vmem:[%s443_s24 + $0x20] sm:$0xff]  ;;  %v472_v6 = vld [vmem:[%s443_s24 + $0x18] sm:$0xff]  ;;  %v471_v7 = vld [vmem:[%s443_s24 + $0x10] sm:$0xff]  ;;  %515 = vperm.xlu1 %1251, %v489_v13  }
  0x3f   : > { %583 = vmatpush1.msra.mxu0 %v475_v3  ;;  %v470_v8 = vld [vmem:[%s443_s24 + $0x8] sm:$0xff]  ;;  %v469_v9 = vld [vmem:[%s443_s24] sm:$0xff]  ;;  %525 = vperm.xlu0 %1250, %v491_v14   ;;  %v484_v28 = vld [vmem:[%s1814_s1 + $0x38] sm:$0xff]  ;;  %s421_s24 = sand.u32 1, %s1396_s10  }
  0x40   : > { %584 = vmatprep.subr.mxu0 %v474_v4  ;;  %v690_v25 = vld [vmem:[%s1817_s4] sm:$0xff]  ;;  %v482_v26 = vld [vmem:[%s1814_s1 + $0x28] sm:$0xff]  ;;  %s1136_s26 = sshll.u32 %s421_s24, 4  ;;  %s929_s12 = scalar_lea.sflag [#allocation4], %s421_s24 }
  0x41   : > { %585 = vmatpush1.msra.mxu0 %v473_v5  ;;  %s423_s29 = scalar_lea.vmem [#allocation7], %s1136_s26 }
  0x42   : > { %586 = vmatprep.subr.mxu0 %v472_v6  ;;  %505 = vperm.xlu1 %1251, %v487_v16   ;;  %s954_s16 = sshll.u32 %s423_s29, 4  ;;  %s1675_s16 = int_to_ptr.vmem [resolvable:$true] %s954_s16 }
  0x43   : > { %587 = vmatpush1.msra.mxu0 %v471_v7  ;;  %510 = vperm.xlu0 %1250, %v488_v17   ;;  %s1328_s28 = scalar_lea.vmem %s1675_s16, 256  ;;  %p1335_p0 = scmp.lt.s32.totalorder %s1675_s16, %s1333_s17 }
  0x44   : > { %588 = vmatprep.subr.mxu0 %v470_v8  ;;  %p1329_p8 = scmp.ne.s32.totalorder %s1675_s16, %s1328_s28  ;;  %p1336_p6 = scmp.lt.s32.totalorder %s1334_s22, %s1328_s28 }
  0x45   : > { %589 = vmatpush1.msra.mxu0 %v469_v9 }
  0x46   : > { %1141 = vmatmul.mubr.msk.f32.vlgmr.msra.gmra.mxu0 %vm533_vm0, %v477_v12  ;;  %495 = vperm.xlu1 %1251, %v485_v19   ;;  %p1330_p11 = pnand %p1329_p8, %p1836_p10  ;;  %p1337_p7 = por %p1336_p6, %p1335_p0 }
  0x47   : > { %628 = vmatprep.mubr.f32.mxu0 %v1420_v0  ;;  %500 = vperm.xlu0 %1250, %v486_v20  }
  0x48   : > { %p1331_p13 = pneg %p1330_p11 }
  0x4a   : > { %1142 = vmatmul.mubr.msk.f32.gmra.mxu0 %vm533_vm0, %v478_v15  ;;  %705 = vperm.xlu1 %1251, %v692_v22   ;;  %p1338_p9 = pnand %p1337_p7, %p1331_p13 }
  0x4b   : > { %634 = vmatprep.mubr.f32.mxu0 %v1420_v0  ;;  %700 = vperm.xlu0 %1250, %v691_v23   ;;  %v687_v23 = vld [vmem:[#allocation2] sm:$0xff] }
  0x4e   : > { %1143 = vmatmul.mubr.msk.f32.gmra.mxu0 %vm533_vm0, %v479_v18 }
  0x4f   : > { %640 = vmatprep.mubr.f32.mxu0 %v1420_v0  ;;  %695 = vperm.xlu0 %1250, %v690_v25   ;;  %v689_v25 = vld [vmem:[#allocation2 + $0x10] sm:$0x3f] }
  0x52   : > { %1144 = vmatmul.mubr.msk.f32.gmra.mxu0 %vm533_vm0, %v480_v21 }
  0x53   : > { %646 = vmatprep.mubr.f32.mxu0 %v1420_v0 }
  0x56   : > { %1145 = vmatmul.mubr.msk.f32.gmra.mxu0 %vm533_vm0, %v481_v24  ;;  %v688_v24 = vld [vmem:[#allocation2 + $0x8] sm:$0xff] }
  0x57   : > { %652 = vmatprep.mubr.f32.mxu0 %v1420_v0 }
  0x5a   : > { %1146 = vmatmul.mubr.msk.f32.gmra.mxu0 %vm533_vm0, %v482_v26  ;;  %v803_v26 = vlaneseq }
  0x5b   : > { %658 = vmatprep.mubr.f32.mxu0 %v1420_v0 }
  0x5e   : > { %1147 = vmatmul.mubr.msk.f32.gmra.mxu0 %vm533_vm0, %v483_v27  ;;  %v804_v27 = vshrl.u32 %v803_v26, 7 }
  0x5f   : > { %664 = vmatprep.mubr.f32.mxu0 %v1420_v0 }
  0x62   : > { %1148 = vmatmul.mubr.msk.f32.gmra.mxu0 %vm533_vm0, %v484_v28 }
  0xb5   : > { %v531_v40 = vpop.permute.xlu0 %530  ;;  %v521_v42 = vpop.permute.xlu1 %520 }
  0xb9   : > { %v516_v47 = vpop.permute.xlu1 %515 }
  0xba   : > { %v526_v45 = vpop.permute.xlu0 %525 }
  0xbd   : > { %v506_v58 = vpop.permute.xlu1 %505 }
  0xbe   : > { %v511_v53 = vpop.permute.xlu0 %510 }
  0xc1   : > { %v496_v10 = vpop.permute.xlu1 %495 }
  0xc2   : > { %v501_v5 = vpop.permute.xlu0 %500 }
 0x106   : > { %v624_v29 = vpop.f32.mrf.mxu0 }
 0x107   : > { %v625_v17 = vadd.f32 %v624_v29, %v496_v10  ;;  %v1658_v28 = vmul.u32.u64.low 2454267026, %v804_v27  ;;  %v1659_v29 = vmul.u32.u64.high 2454267026, %v804_v27, %v1658_v28 }
 0x108   : > { %v626_v30 = vpop.f32.mrf.mxu0 }
 0x109   : > { %v627_v15 = vadd.f32 %v626_v30, %v496_v10  ;;  %v671_v22 = vmax.f32 %v625_v17, 0.0  ;;  %v805_v30 = vadd.s32 8, %v804_v27  ;;  %vm812_vm2 = vc.u32 %v1658_v28, 2454267026 }
 0x10a   : > { %v630_v31 = vpop.f32.mrf.mxu0 }
 0x10b   : > { %v631_v13 = vadd.f32 %v630_v31, %v501_v5  ;;  %v672_v21 = vmax.f32 %v627_v15, 0.0 }
 0x10c   : > { %v632_v32 = vpop.f32.mrf.mxu0 }
 0x10d   : > { %v633_v11 = vadd.f32 %v632_v32, %v501_v5  ;;  %v673_v20 = vmax.f32 %v631_v13, 0.0  ;;  %v1661_v31 = vmul.u32.u64.low 2454267026, %v805_v30  ;;  %v1662_v32 = vmul.u32.u64.high 2454267026, %v805_v30, %v1661_v31 }
 0x10e   : > { %v636_v33 = vpop.f32.mrf.mxu0 }
 0x10f   : > { %v637_v8 = vadd.f32 %v636_v33, %v506_v58  ;;  %v674_v19 = vmax.f32 %v633_v11, 0.0  ;;  %v813_v33 = vsel %vm812_vm2, 1, %v1421_v1  ;;  %vm826_vm3 = vc.u32 %v1661_v31, 2454267026 }
 0x110   : > { %v638_v34 = vpop.f32.mrf.mxu0 }
 0x111   : > { %v639_v6 = vadd.f32 %v638_v34, %v506_v58  ;;  %v675_v18 = vmax.f32 %v637_v8, 0.0  ;;  %v814_v34 = vadd.s32 %v1659_v29, %v813_v33 }
 0x112   : > { %v642_v35 = vpop.f32.mrf.mxu0 }
 0x113   : > { %v643_v3 = vadd.f32 %v642_v35, %v511_v53  ;;  %v676_v16 = vmax.f32 %v639_v6, 0.0  ;;  %v815_v35 = vshrl.u32 %v814_v34, 2 }
 0x114   : > { %v644_v36 = vpop.f32.mrf.mxu0 }
 0x115   : > { %v645_v63 = vadd.f32 %v644_v36, %v511_v53  ;;  %v677_v14 = vmax.f32 %v643_v3, 0.0 }
 0x116   : > { %v648_v37 = vpop.f32.mrf.mxu0 }
 0x117   : > { %v649_v61 = vadd.f32 %v648_v37, %v516_v47  ;;  %v678_v12 = vmax.f32 %v645_v63, 0.0  ;;  %v816_v37 = vmul.u32 7, %v815_v35 }
 0x118   : > { %v650_v38 = vpop.f32.mrf.mxu0 }
 0x119   : > { %v651_v59 = vadd.f32 %v650_v38, %v516_v47  ;;  %v679_v9 = vmax.f32 %v649_v61, 0.0 }
 0x11a   : > { %v654_v39 = vpop.f32.mrf.mxu0 }
 0x11b   : > { %v655_v56 = vadd.f32 %v654_v39, %v521_v42  ;;  %v680_v7 = vmax.f32 %v651_v59, 0.0  ;;  %v701_v39 = vpop.permute.xlu0 %700 }
 0x11c   : > { %v656_v41 = vpop.f32.mrf.mxu0 }
 0x11d   : > { %v657_v54 = vadd.f32 %v656_v41, %v521_v42  ;;  %v681_v4 = vmax.f32 %v655_v56, 0.0 }
 0x11e   : > { %v660_v43 = vpop.f32.mrf.mxu0 }
 0x11f   : > { %v661_v52 = vadd.f32 %v660_v43, %v526_v45  ;;  %v682_v2 = vmax.f32 %v657_v54, 0.0  ;;  %v696_v42 = vpop.permute.xlu0 %695 }
 0x120   : > { %v662_v44 = vpop.f32.mrf.mxu0 }
 0x121   : > { %v663_v50 = vadd.f32 %v662_v44, %v526_v45  ;;  %v683_v62 = vmax.f32 %v661_v52, 0.0 }
 0x122   : > { %v666_v46 = vpop.f32.mrf.mxu0 }
 0x123   : > { %v667_v48 = vadd.f32 %v666_v46, %v531_v40  ;;  %v684_v60 = vmax.f32 %v663_v50, 0.0 }
 0x124   : > { %v668_v49 = vpop.f32.mrf.mxu0 }
 0x125   : > { %v669_v51 = vadd.f32 %v668_v49, %v531_v40  ;;  %v685_v57 = vmax.f32 %v667_v48, 0.0  ;;  %v817_v40 = vsub.s32 %v804_v27, %v816_v37 }
 0x127   : > { %v686_v55 = vmax.f32 %v669_v51, 0.0  ;;  %vm834_vm4 = vcmp.ne.s32.totalorder %v817_v40, 0  ;;  %vm836_vm5 = vcmp.lt.s32.totalorder %v817_v40, 0  ;;  %v840_v47 = vadd.s32 7, %v817_v40 }
 0x128   : > { %vm1677_vm6 = vmand %vm836_vm5, %vm834_vm4 }
 0x129   : > { %734 = vmatprep.subr.mxu1 %v686_v55 }
 0x12a   : > { %735 = vmatpush1.msra.mxu1 %v685_v57 }
 0x12b   : > { %736 = vmatprep.subr.mxu1 %v684_v60 }
 0x12c   : > { %737 = vmatpush1.msra.mxu1 %v683_v62 }
 0x12d   : > { %738 = vmatprep.subr.mxu1 %v682_v2 }
 0x12e   : > { %739 = vmatpush1.msra.mxu1 %v681_v4 }
 0x12f   : > { %740 = vmatprep.subr.mxu1 %v680_v7 }
 0x130   : > { %741 = vmatpush1.msra.mxu1 %v679_v9 }
 0x131   : > { %742 = vmatprep.subr.mxu1 %v678_v12 }
 0x132   : > { %743 = vmatpush1.msra.mxu1 %v677_v14 }
 0x133   : > { %744 = vmatprep.subr.mxu1 %v676_v16 }
 0x134   : > { %745 = vmatpush1.msra.mxu1 %v675_v18 }
 0x135   : > { %746 = vmatprep.subr.mxu1 %v674_v19 }
 0x136   : > { %747 = vmatpush1.msra.mxu1 %v673_v20 }
 0x137   : > { %748 = vmatprep.subr.mxu1 %v672_v21 }
 0x138   : > { %749 = vmatpush1.msra.mxu1 %v671_v22 }
 0x139   : > { %1149 = vmatmul.mubr.msk.f32.vlgmr.msra.gmra.mxu1 %vm708_vm1, %v687_v23 }
 0x13a   : > { %788 = vmatprep.mubr.f32.mxu1 %v1420_v0 }
 0x13d   : > { %1150 = vmatmul.mubr.msk.f32.gmra.mxu1 %vm708_vm1, %v688_v24 }
 0x13e   : > { %794 = vmatprep.mubr.f32.mxu1 %v1420_v0  ;;  %v827_v0 = vsel %vm826_vm3, 1, %v1421_v1 }
 0x13f   : > { %v828_v36 = vadd.s32 %v1662_v32, %v827_v0 }
 0x141   : > { %1151 = vmatmul.mubr.msk.f32.gmra.mxu1 %vm708_vm1, %v689_v25  ;;  %v829_v38 = vshrl.u32 %v828_v36, 2 }
 0x143   : > { %v830_v41 = vmul.u32 7, %v829_v38 }
 0x145   : > { %v831_v45 = vsub.s32 %v805_v30, %v830_v41 }
 0x147   : > { %vm835_vm7 = vcmp.ne.s32.totalorder %v831_v45, 0  ;;  %vm837_vm8 = vcmp.lt.s32.totalorder %v831_v45, 0 }
 0x1f9   : > { %v784_v43 = vpop.f32.mrf.mxu1 }
 0x1fa   : > { %v785_v44 = vadd.f32 %v784_v43, %v696_v42 }
 0x1fb   : > { %v786_v1 = vpop.f32.mrf.mxu1 }
 0x1fc   : > { %801 = vst [vmem:[%s423_s29] sm:$0xff] %v785_v44  ;;  %v787_v46 = vadd.f32 %v786_v1, %v696_v42 }
 0x1fd   : > { %v790_v48 = vpop.f32.mrf.mxu1 }
 0x1fe   : > { %802 = vst [vmem:[%s423_s29 + $0x8] sm:$0xff] %v787_v46  ;;  %v1681_v50 = vadd.f32 %v790_v48, %v701_v39 }
 0x1ff   : > { %v792_v51 = vpop.f32.mrf.mxu1 }
 0x200   : > { %1341 = shalt.err (!%p1338_p9)
}
 0x201   : > { %s1342_s23 = scalar_lea.hbm %s1673_s25, 256  ;;  %s1346_s27 = scalar_lea.hbm %s1821_s8, 512 }
 0x202   : > { %p1343_p12 = scmp.ne.s32.totalorder %s1673_s25, %s1342_s23  ;;  %p1347_p5 = scmp.lt.s32.totalorder %s1673_s25, %s1821_s8 }
 0x203   : > { %p1348_p3 = scmp.lt.s32.totalorder %s1346_s27, %s1342_s23 }
 0x204   : > { %p1344_p1 = pnand %p1343_p12, %p1836_p10 }
 0x205   : > { %p1349_p4 = por %p1348_p3, %p1347_p5 }
 0x206   : > { %p1345_p2 = pneg %p1344_p1 }
 0x208   : > { %p1350_p8 = pnand %p1349_p4, %p1345_p2 }
 0x20a   : > { %1353 = shalt.err (!%p1350_p8)
}
 0x20b   : > { %1176 = dma.vmem_to_hbm [thread:$0]  (%p1836_p10), %s1675_s16, 256, %s1673_s25, %s929_s12   ;;  %v1705_v52 = vsel %vm1677_vm6, %v840_v47, %v817_v40  ;;  %v1152_v53 = vmul.f32 -1.442695, %v1681_v50  ;;  %v793_v54 = vadd.f32 %v792_v51, %v701_v39  ;;  %v796_v55 = vpop.f32.mrf.mxu1  ;;  %v841_v56 = vadd.s32 7, %v831_v45  ;;  %v706_v57 = vpop.permute.xlu1 %705  ;;  %vm839_vm9 = vmand %vm837_vm8, %vm835_vm7  ;;  %v852_v21 = vld [vmem:[%s1818_s5] sm:$0xff]  ;;  %v908_v24 = vld [vmem:[#allocation5] sm:$0xff] }
 0x20c   : > { %vm846_vm10 = vcmp.ge.s32.totalorder %v1705_v52, 3  ;;  %vm848_vm11 = vcmp.lt.s32.totalorder %v1705_v52, 6  ;;  %v797_v59 = vadd.f32 %v796_v55, %v706_v57  ;;  %v856_v23 = vmul.f32 %v852_v21, %v1681_v50  ;;  %s1162_s20 = sshll.u32 %s1576_s13, 5  ;;  %v860_v25 = vld [vmem:[%s1819_s6] sm:$0xff]  ;;  %v853_v26 = vld [vmem:[%s1818_s5 + $0x8] sm:$0xff] }
 0x20d   : > { %1252 = vpow2.f32 %v1152_v53  ;;  %v1153_v58 = vmul.f32 -1.442695, %v793_v54  ;;  %v798_v60 = vpop.f32.mrf.mxu1  ;;  %v1714_v62 = vsel %vm839_vm9, %v841_v56, %v831_v45  ;;  %vm1716_vm12 = vmand %vm846_vm10, %vm848_vm11  ;;  %v854_v28 = vld [vmem:[%s1818_s5 + $0x10] sm:$0x3f]  ;;  %vm844_vm0 = vcmp.lt.s32.totalorder %v1705_v52, 3  ;;  %s1755_s24 = scalar_lea.vmem %s1822_s9, %s1162_s20  ;;  %v909_v34 = vld [vmem:[#allocation5 + $0x8] sm:$0xff] }
 0x20e   : > { %v1712_v61 = vadd.f32 %v798_v60, %v706_v57  ;;  %v1154_v63 = vmul.f32 -1.442695, %v797_v59  ;;  %vm847_vm13 = vcmp.ge.s32.totalorder %v1714_v62, 3  ;;  %vm849_vm14 = vcmp.lt.s32.totalorder %v1714_v62, 6  ;;  %v861_v36 = vld [vmem:[%s1819_s6 + $0x8] sm:$0xff] }
 0x20f   : > { %1254 = vpow2.f32 %v1153_v58  ;;  %v868_v4 = vsel %vm1716_vm12, %v1681_v50, 0.0  ;;  %vm1726_vm15 = vmand %vm847_vm13, %vm849_vm14  ;;  %v869_v7 = vsel %vm1716_vm12, %v793_v54, 0.0  ;;  %v864_v32 = vadd.f32 %v860_v25, %v856_v23  ;;  %v910_v38 = vld [vmem:[#allocation5 + $0x10] sm:$0x3f]  ;;  %v855_v39 = vld [vmem:[%s1818_s5 + $0x18] sm:$0x3f] }
 0x210   : > { %1256 = vpow2.f32 %v1154_v63  ;;  %v1155_v3 = vmul.f32 -1.442695, %v1712_v61  ;;  %v872_v6 = vmul.f32 1.442695, %v868_v4  ;;  %v870_v8 = vsel %vm1726_vm15, %v797_v59, 0.0 }
 0x211   : > { %v874_v11 = vmul.f32 1.442695, %v869_v7  ;;  %v876_v12 = vmul.f32 1.442695, %v870_v8  ;;  %v871_v13 = vsel %vm1726_vm15, %v1712_v61, 0.0  ;;  %v857_v33 = vmul.f32 %v853_v26, %v793_v54 }
 0x212   : > { %1258 = vpow2.f32 %v1155_v3  ;;  %v878_v17 = vmul.f32 1.442695, %v871_v13  ;;  %v858_v37 = vmul.f32 %v854_v28, %v797_v59  ;;  %v862_v42 = vld [vmem:[%s1819_s6 + $0x10] sm:$0x3f]  ;;  %vm845_vm1 = vcmp.lt.s32.totalorder %v1714_v62, 3 }
 0x213   : > { %1260 = vpow2.f32 %v872_v6  ;;  %v865_v46 = vadd.f32 %v861_v36, %v857_v33  ;;  %v859_v49 = vmul.f32 %v855_v39, %v1712_v61  ;;  %v911_v50 = vld [vmem:[#allocation5 + $0x18] sm:$0x3f]  ;;  %v863_v54 = vld [vmem:[%s1819_s6 + $0x18] sm:$0x3f] }
 0x214   : > { %v866_v53 = vadd.f32 %v862_v42, %v858_v37 }
 0x215   : > { %v867_v61 = vadd.f32 %v863_v54, %v859_v49 }
 0x21a   : > { %v1253_v9 = vpop.eup %1252 }
 0x21b   : > { %v896_v10 = vadd.f32 1.0, %v1253_v9 }
 0x21c   : > { %v1255_v14 = vpop.eup %1254 }
 0x21d   : > { %1262 = vrcp.f32 %v896_v10  ;;  %v1257_v15 = vpop.eup %1256  ;;  %v897_v16 = vadd.f32 1.0, %v1255_v14 }
 0x21e   : > { %1264 = vpow2.f32 %v874_v11  ;;  %v898_v18 = vadd.f32 1.0, %v1257_v15 }
 0x21f   : > { %1266 = vpow2.f32 %v876_v12  ;;  %v1259_v19 = vpop.eup %1258 }
 0x220   : > { %1268 = vrcp.f32 %v897_v16  ;;  %v899_v20 = vadd.f32 1.0, %v1259_v19  ;;  %v1261_v22 = vpop.eup %1260 }
 0x221   : > { %1270 = vrcp.f32 %v898_v18  ;;  %v880_v29 = vmul.f32 %v1261_v22, %v852_v21 }
 0x222   : > { %1272 = vpow2.f32 %v878_v17 }
 0x223   : > { %1274 = vrcp.f32 %v899_v20 }
 0x22a   : > { %v1263_v27 = vpop.eup %1262 }
 0x22b   : > { %v912_v30 = vmul.f32 %v1263_v27, %v908_v24  ;;  %v1265_v31 = vpop.eup %1264 }
 0x22c   : > { %v1267_v0 = vpop.eup %1266  ;;  %v881_v44 = vmul.f32 %v1265_v31, %v853_v26 }
 0x22d   : > { %v916_v35 = vsel %vm1716_vm12, %v880_v29, %v912_v30  ;;  %v1269_v40 = vpop.eup %1268  ;;  %v882_v47 = vmul.f32 %v1267_v0, %v854_v28 }
 0x22e   : > { %v920_v41 = vsel %vm844_vm0, %v864_v32, %v916_v35  ;;  %v1271_v43 = vpop.eup %1270  ;;  %v913_v45 = vmul.f32 %v1269_v40, %v909_v34 }
 0x22f   : > { %924 = vst [vmem:[%s1755_s24] sm:$0xff] %v920_v41  ;;  %v1273_v1 = vpop.eup %1272  ;;  %v914_v48 = vmul.f32 %v1271_v43, %v910_v38 }
 0x230   : > { %v917_v51 = vsel %vm1716_vm12, %v881_v44, %v913_v45  ;;  %v1275_v55 = vpop.eup %1274  ;;  %v883_v59 = vmul.f32 %v1273_v1, %v855_v39 }
 0x231   : > { %v921_v56 = vsel %vm844_vm0, %v865_v46, %v917_v51  ;;  %v918_v57 = vsel %vm1726_vm15, %v882_v47, %v914_v48  ;;  %v915_v60 = vmul.f32 %v1275_v55, %v911_v50 }
 0x232   : > { %925 = vst [vmem:[%s1755_s24 + $0x8] sm:$0xff] %v921_v56  ;;  %v922_v58 = vsel %vm845_vm1, %v866_v53, %v918_v57 }
 0x233   : > { %926 = vst [vmem:[%s1755_s24 + $0x10] sm:$0x3f] %v922_v58  ;;  %v919_v63 = vsel %vm1726_vm15, %v883_v59, %v915_v60 }
 0x234   : > { %v923_v2 = vsel %vm845_vm1, %v867_v61, %v919_v63 }
 0x235   : > { %927 = vst [vmem:[%s1755_s24 + $0x18] sm:$0x3f] %v923_v2 }
 0x236 PF: > { %p1193_p10 = scmp.ge.s32.totalorder %s1412_s14, 2  ;;  %s970_s12 = sand.u32 1, %s1392_s30  }
 0x237   : > { %p1841_p11 = scmp.ne.s32.totalorder %s1829_s21, 0  ;;  %s971_s28 = scalar_lea.sflag [#allocation4], %s970_s12 }
 0x239   : > { %p1186_p13 = pnand %p1193_p10, %p1841_p11 }
 0x23b   : > { %p1187_p0 = pneg %p1186_p13 }
 0x23d   : > { %1387 = dma.done.wait (%p1187_p0), %s971_s28, 256  }
 0x23e   : > { %1389 = vsyncadd (%p1187_p0), %s971_s28, 4294967040  ;;  %s25_s14 = sadd.s32 1, %s1412_s14   ;;  %s1842_s15 = sld [smem:[#allocation13_spill]] }
 0x23f   : > { %p22_p6 = scmp.ge.s32.totalorder %s25_s14, 4   ;;  %s1843_s12 = sld [smem:[#allocation11_spill]] }
 0x240   : > { %s1844_s13 = sld [smem:[#allocation12_spill]]  ;;  %s1845_s30 = smov %s1396_s10 }
 0x241   : > { %s1846_s10 = smov %s1400_s11  ;;  %24 = sbr.rel (!%p22_p6) target bundleno = 6 (0x6), region = 115 }
 0x244   : > { %s1847_s11 = smov %s1842_s15 }
 0x246   :  { %988 = vsyncpa [#allocation3], 1 }
 0x247   :  { %990 = vsyncpa [#allocation3 + $0x1], 1 }
 0x248   :  { %991 = vsyncpa [#allocation6], 1 }
 0x249   :  { %992 = vsyncpa [#allocation4], 1 }
 0x24a   :  { %994 = vsyncpa [#allocation4 + $0x1], 1 }

</bundles_post_ra>
